<compile_context>
chip_gen: v7x
topology: tpu7x:2x2x1
jax: 0.10.0
libtpu: 0.0.40
codegen_flags: <defaults>
</compile_context>

<pallas_src>
import math

import jax
import jax.numpy as jnp
from jax.experimental import pallas as pl
from jax.experimental.pallas import tpu as pltpu

INPUT_SIZE = 3
HIDDEN_SIZE = 6
OUTPUT_SIZE = 1

SUBLANES = 8
LANES = 128
PACK = SUBLANES * LANES          # 1024: batch granularity of the packed layout

# Batch-tile cap.  Per grid step the VMEM tiles are
#   x tile:   INPUT_SIZE * 8 * (TB/8) * 4 B = 12 * TB bytes
#   out tile:              8 * (TB/8) * 4 B =  4 * TB bytes
# -> double-buffered ~= 32 * TB bytes (TB = 65536 => ~2 MiB), comfortably inside
# the scoped-VMEM defaults on v5e/v6e (32 of 128 MiB) and v7x (32 of 64 MiB).
TB_MAX = 65536

# Below this batch size the pallas_call launch + wrapper relayout dominate and
# a plain fused XLA expression is strictly faster on every TPU generation.
SMALL_BATCH_FASTPATH = 4096


def _round_up(n: int, m: int) -> int:
    return ((n + m - 1) // m) * m


def _mlp_kernel(w1_ref, b1_ref, w2_ref, b2_ref, x_ref, o_ref):
    """out = W2 @ relu(W1 @ x + b1) + b2, unrolled as VPU broadcast-FMAs.

    w1_ref: SMEM (HIDDEN_SIZE*INPUT_SIZE,)  row-major PyTorch layout w1[h, i]
    b1_ref: SMEM (HIDDEN_SIZE,)
    w2_ref: SMEM (HIDDEN_SIZE,)             (OUTPUT_SIZE == 1)
    b2_ref: SMEM (OUTPUT_SIZE,)
    x_ref:  VMEM (INPUT_SIZE, 8, TB//8)     feature-major, batch on sublanes+lanes
    o_ref:  VMEM (8, TB//8)
    """
    # Read each feature slab straight from the ref (no full-tile VMEM temp).
    x0 = x_ref[0]                                     # (8, TB//8) f32
    x1 = x_ref[1]
    x2 = x_ref[2]
    # Start the accumulator at b2 (saves the trailing vector add).
    acc = jnp.full(o_ref.shape, b2_ref[0], jnp.float32)
    for h in range(HIDDEN_SIZE):                      # fully unrolled (6 iters)
        hid = (w1_ref[h * INPUT_SIZE + 0] * x0
               + w1_ref[h * INPUT_SIZE + 1] * x1
               + w1_ref[h * INPUT_SIZE + 2] * x2
               + b1_ref[h])
        hid = jnp.maximum(hid, 0.0)                   # ReLU on the VPU
        acc = acc + w2_ref[h] * hid
    o_ref[...] = acc


def linear_regression_forward(x, w1, b1, w2, b2, *, force_pallas=False):
    """x: (B, 3); w1: (6, 3) [PyTorch (out,in)]; b1: (6,); w2: (1, 6); b2: (1,)
    -> (B, 1) float32."""
    B = x.shape[0]
    x = x.astype(jnp.float32)
    w1 = w1.astype(jnp.float32)
    b1 = b1.astype(jnp.float32)
    w2 = w2.astype(jnp.float32)
    b2 = b2.astype(jnp.float32)

    if B == 0:
        return jnp.zeros((0, OUTPUT_SIZE), jnp.float32)

    if (not force_pallas) and B < SMALL_BATCH_FASTPATH:
        # Small-batch fast path: one fused XLA expression, no kernel launch.
        hid = jnp.maximum(x @ w1.T + b1, 0.0)
        return hid @ w2.T + b2

    # ---------------------------- Pallas path -------------------------------
    # Pad the batch only to the packed-layout granularity (8 sublanes x 128
    # lanes = 1024), NOT to a multiple of the tile; ragged last blocks are
    # handled by the pipeline (OOB reads are junk, OOB writes are dropped).
    B_pad = _round_up(B, PACK)
    # Tile as large as possible (amortise per-step overhead) but keep >= 2 grid
    # steps for large batches so v7x's two TensorCores both get work.
    TB = min(TB_MAX, max(PACK, _round_up(pl.cdiv(B_pad, 2), PACK)))
    TBL = TB // SUBLANES                              # lanes per tile

    # Single relayout pass: pad + transpose + reshape into feature-major form
    # with the batch packed onto 8 sublanes.  (If the producer can already hand
    # over x as (3, 8, B/8), this pass disappears entirely.)
    x_pad = jnp.pad(x, ((0, B_pad - B), (0, 0)))      # (B_pad, 3)
    x_packed = x_pad.T.reshape(INPUT_SIZE, SUBLANES, B_pad // SUBLANES)

    w1_flat = w1.reshape(-1)                          # (18,) row-major w1[h, i]
    b1_flat = b1.reshape(-1)                          # (6,)
    w2_flat = w2.reshape(-1)                          # (6,)
    b2_flat = b2.reshape(-1)                          # (1,)

    smem_spec = pl.BlockSpec(memory_space=pltpu.MemorySpace.SMEM)

    o_packed = pl.pallas_call(
        _mlp_kernel,
        out_shape=jax.ShapeDtypeStruct((SUBLANES, B_pad // SUBLANES), jnp.float32),
        grid=(pl.cdiv(B_pad, TB),),
        in_specs=[
            smem_spec,                                # w1 (scalars in SMEM)
            smem_spec,                                # b1
            smem_spec,                                # w2
            smem_spec,                                # b2
            pl.BlockSpec((INPUT_SIZE, SUBLANES, TBL), lambda i: (0, 0, i)),
        ],
        out_specs=pl.BlockSpec((SUBLANES, TBL), lambda i: (0, i)),
        compiler_params=pltpu.CompilerParams(
            dimension_semantics=("parallel",),        # 2x on v7x's dual TC
        ),
    )(w1_flat, b1_flat, w2_flat, b2_flat, x_packed)

    # Undo the packing (same row-major mapping as the input reshape) and drop
    # the padded batch rows BEFORE any consumer sees the result.
    return o_packed.reshape(B_pad)[:B].reshape(B, OUTPUT_SIZE)


def init_params(key):
    """Deterministic xavier_uniform(gain=sqrt(2)) weights, zero biases,
    PyTorch (out, in) layout (matches the nn.Module's init)."""
    k1, k2 = jax.random.split(key)
    gain = math.sqrt(2.0)

    def xavier_uniform(k, fan_out, fan_in):
        bound = gain * math.sqrt(6.0 / (fan_in + fan_out))
        return jax.random.uniform(k, (fan_out, fan_in), jnp.float32, -bound, bound)

    w1 = xavier_uniform(k1, HIDDEN_SIZE, INPUT_SIZE)   # (6, 3)
    b1 = jnp.zeros((HIDDEN_SIZE,), jnp.float32)        # (6,)
    w2 = xavier_uniform(k2, OUTPUT_SIZE, HIDDEN_SIZE)  # (1, 6)
    b2 = jnp.zeros((OUTPUT_SIZE,), jnp.float32)        # (1,)
    return w1, b1, w2, b2


def _reference(x, w1, b1, w2, b2):
    return jnp.maximum(x @ w1.T + b1, 0.0) @ w2.T + b2


if __name__ == "__main__":
    key = jax.random.PRNGKey(0)
    kx1, kx2, kx3, kp = jax.random.split(key, 4)
    w1, b1, w2, b2 = init_params(kp)

    # 1) Small batch through the Pallas kernel (forced) — matches module usage.
    x1 = jax.random.normal(kx1, (8, INPUT_SIZE), jnp.float32)
    out1 = linear_regression_forward(x1, w1, b1, w2, b2, force_pallas=True)
    jax.block_until_ready(out1)
    assert out1.shape == (8, OUTPUT_SIZE)
    assert jnp.allclose(out1, _reference(x1, w1, b1, w2, b2), atol=1e-5, rtol=1e-5)

    # 2) Batch not a multiple of the 1024-element packing granularity; needs a
    #    2-step grid with a ragged last block (exercises OOB read/write masking).
    x2 = jax.random.normal(kx2, (2304, INPUT_SIZE), jnp.float32)
    out2 = linear_regression_forward(x2, w1, b1, w2, b2, force_pallas=True)
    jax.block_until_ready(out2)
    assert out2.shape == (2304, OUTPUT_SIZE)
    assert jnp.allclose(out2, _reference(x2, w1, b1, w2, b2), atol=1e-5, rtol=1e-5)

    # 3) Default small-batch fast path (no kernel launch).
    x3 = jax.random.normal(kx3, (300, INPUT_SIZE), jnp.float32)
    out3 = linear_regression_forward(x3, w1, b1, w2, b2)
    jax.block_until_ready(out3)
    assert out3.shape == (300, OUTPUT_SIZE)
    assert jnp.allclose(out3, _reference(x3, w1, b1, w2, b2), atol=1e-5, rtol=1e-5)

    print("KERNEL_OK")
</pallas_src>

<mosaic_0001>
module attributes {stable_mosaic.version = 11 : i64} {
  func.func @_mlp_kernel(%arg0: i32, %arg1: memref<18xf32, #tpu.memory_space<smem>>, %arg2: memref<6xf32, #tpu.memory_space<smem>>, %arg3: memref<6xf32, #tpu.memory_space<smem>>, %arg4: memref<1xf32, #tpu.memory_space<smem>>, %arg5: memref<3x8x128xf32, #tpu.memory_space<vmem>>, %arg6: memref<8x128xf32, #tpu.memory_space<vmem>>) attributes {dimension_semantics = [#tpu.dimension_semantics<parallel>], iteration_bounds = array<i64: 1>, scalar_prefetch = 0 : i64, scratch_operands = 0 : i64, tpu.core_type = #tpu.core_type<tc>, window_params = [{transform_indices = @transform_0, window_bounds = array<i64: 18>}, {transform_indices = @transform_1, window_bounds = array<i64: 6>}, {transform_indices = @transform_2, window_bounds = array<i64: 6>}, {transform_indices = @transform_3, window_bounds = array<i64: 1>}, {transform_indices = @transform_4, window_bounds = array<i64: 3, 8, 128>}, {transform_indices = @transform_5, window_bounds = array<i64: 8, 128>}]} {
    %c0 = arith.constant 0 : index
    %c0_0 = arith.constant 0 : index
    %c0_1 = arith.constant 0 : index
    %0 = vector.load %arg5[%c0, %c0_0, %c0_1] : memref<3x8x128xf32, #tpu.memory_space<vmem>>, vector<1x8x128xf32>
    %1 = vector.shape_cast %0 : vector<1x8x128xf32> to vector<8x128xf32>
    %c1 = arith.constant 1 : index
    %c0_2 = arith.constant 0 : index
    %c0_3 = arith.constant 0 : index
    %2 = vector.load %arg5[%c1, %c0_2, %c0_3] : memref<3x8x128xf32, #tpu.memory_space<vmem>>, vector<1x8x128xf32>
    %3 = vector.shape_cast %2 : vector<1x8x128xf32> to vector<8x128xf32>
    %c2 = arith.constant 2 : index
    %c0_4 = arith.constant 0 : index
    %c0_5 = arith.constant 0 : index
    %4 = vector.load %arg5[%c2, %c0_4, %c0_5] : memref<3x8x128xf32, #tpu.memory_space<vmem>>, vector<1x8x128xf32>
    %5 = vector.shape_cast %4 : vector<1x8x128xf32> to vector<8x128xf32>
    %c0_6 = arith.constant 0 : index
    %6 = memref.load %arg4[%c0_6] : memref<1xf32, #tpu.memory_space<smem>>
    %7 = vector.broadcast %6 : f32 to vector<8x128xf32>
    %c0_7 = arith.constant 0 : index
    %8 = memref.load %arg1[%c0_7] : memref<18xf32, #tpu.memory_space<smem>>
    %9 = vector.broadcast %8 : f32 to vector<8x128xf32>
    %10 = arith.mulf %9, %1 : vector<8x128xf32>
    %c1_8 = arith.constant 1 : index
    %11 = memref.load %arg1[%c1_8] : memref<18xf32, #tpu.memory_space<smem>>
    %12 = vector.broadcast %11 : f32 to vector<8x128xf32>
    %13 = arith.mulf %12, %3 : vector<8x128xf32>
    %14 = arith.addf %10, %13 : vector<8x128xf32>
    %c2_9 = arith.constant 2 : index
    %15 = memref.load %arg1[%c2_9] : memref<18xf32, #tpu.memory_space<smem>>
    %16 = vector.broadcast %15 : f32 to vector<8x128xf32>
    %17 = arith.mulf %16, %5 : vector<8x128xf32>
    %18 = arith.addf %14, %17 : vector<8x128xf32>
    %c0_10 = arith.constant 0 : index
    %19 = memref.load %arg2[%c0_10] : memref<6xf32, #tpu.memory_space<smem>>
    %20 = vector.broadcast %19 : f32 to vector<8x128xf32>
    %21 = arith.addf %18, %20 : vector<8x128xf32>
    %cst = arith.constant 0.000000e+00 : f32
    %22 = vector.broadcast %cst : f32 to vector<8x128xf32>
    %23 = arith.maximumf %21, %22 : vector<8x128xf32>
    %c0_11 = arith.constant 0 : index
    %24 = memref.load %arg3[%c0_11] : memref<6xf32, #tpu.memory_space<smem>>
    %25 = vector.broadcast %24 : f32 to vector<8x128xf32>
    %26 = arith.mulf %25, %23 : vector<8x128xf32>
    %27 = arith.addf %7, %26 : vector<8x128xf32>
    %c3 = arith.constant 3 : index
    %28 = memref.load %arg1[%c3] : memref<18xf32, #tpu.memory_space<smem>>
    %29 = vector.broadcast %28 : f32 to vector<8x128xf32>
    %30 = arith.mulf %29, %1 : vector<8x128xf32>
    %c4 = arith.constant 4 : index
    %31 = memref.load %arg1[%c4] : memref<18xf32, #tpu.memory_space<smem>>
    %32 = vector.broadcast %31 : f32 to vector<8x128xf32>
    %33 = arith.mulf %32, %3 : vector<8x128xf32>
    %34 = arith.addf %30, %33 : vector<8x128xf32>
    %c5 = arith.constant 5 : index
    %35 = memref.load %arg1[%c5] : memref<18xf32, #tpu.memory_space<smem>>
    %36 = vector.broadcast %35 : f32 to vector<8x128xf32>
    %37 = arith.mulf %36, %5 : vector<8x128xf32>
    %38 = arith.addf %34, %37 : vector<8x128xf32>
    %c1_12 = arith.constant 1 : index
    %39 = memref.load %arg2[%c1_12] : memref<6xf32, #tpu.memory_space<smem>>
    %40 = vector.broadcast %39 : f32 to vector<8x128xf32>
    %41 = arith.addf %38, %40 : vector<8x128xf32>
    %cst_13 = arith.constant 0.000000e+00 : f32
    %42 = vector.broadcast %cst_13 : f32 to vector<8x128xf32>
    %43 = arith.maximumf %41, %42 : vector<8x128xf32>
    %c1_14 = arith.constant 1 : index
    %44 = memref.load %arg3[%c1_14] : memref<6xf32, #tpu.memory_space<smem>>
    %45 = vector.broadcast %44 : f32 to vector<8x128xf32>
    %46 = arith.mulf %45, %43 : vector<8x128xf32>
    %47 = arith.addf %27, %46 : vector<8x128xf32>
    %c6 = arith.constant 6 : index
    %48 = memref.load %arg1[%c6] : memref<18xf32, #tpu.memory_space<smem>>
    %49 = vector.broadcast %48 : f32 to vector<8x128xf32>
    %50 = arith.mulf %49, %1 : vector<8x128xf32>
    %c7 = arith.constant 7 : index
    %51 = memref.load %arg1[%c7] : memref<18xf32, #tpu.memory_space<smem>>
    %52 = vector.broadcast %51 : f32 to vector<8x128xf32>
    %53 = arith.mulf %52, %3 : vector<8x128xf32>
    %54 = arith.addf %50, %53 : vector<8x128xf32>
    %c8 = arith.constant 8 : index
    %55 = memref.load %arg1[%c8] : memref<18xf32, #tpu.memory_space<smem>>
    %56 = vector.broadcast %55 : f32 to vector<8x128xf32>
    %57 = arith.mulf %56, %5 : vector<8x128xf32>
    %58 = arith.addf %54, %57 : vector<8x128xf32>
    %c2_15 = arith.constant 2 : index
    %59 = memref.load %arg2[%c2_15] : memref<6xf32, #tpu.memory_space<smem>>
    %60 = vector.broadcast %59 : f32 to vector<8x128xf32>
    %61 = arith.addf %58, %60 : vector<8x128xf32>
    %cst_16 = arith.constant 0.000000e+00 : f32
    %62 = vector.broadcast %cst_16 : f32 to vector<8x128xf32>
    %63 = arith.maximumf %61, %62 : vector<8x128xf32>
    %c2_17 = arith.constant 2 : index
    %64 = memref.load %arg3[%c2_17] : memref<6xf32, #tpu.memory_space<smem>>
    %65 = vector.broadcast %64 : f32 to vector<8x128xf32>
    %66 = arith.mulf %65, %63 : vector<8x128xf32>
    %67 = arith.addf %47, %66 : vector<8x128xf32>
    %c9 = arith.constant 9 : index
    %68 = memref.load %arg1[%c9] : memref<18xf32, #tpu.memory_space<smem>>
    %69 = vector.broadcast %68 : f32 to vector<8x128xf32>
    %70 = arith.mulf %69, %1 : vector<8x128xf32>
    %c10 = arith.constant 10 : index
    %71 = memref.load %arg1[%c10] : memref<18xf32, #tpu.memory_space<smem>>
    %72 = vector.broadcast %71 : f32 to vector<8x128xf32>
    %73 = arith.mulf %72, %3 : vector<8x128xf32>
    %74 = arith.addf %70, %73 : vector<8x128xf32>
    %c11 = arith.constant 11 : index
    %75 = memref.load %arg1[%c11] : memref<18xf32, #tpu.memory_space<smem>>
    %76 = vector.broadcast %75 : f32 to vector<8x128xf32>
    %77 = arith.mulf %76, %5 : vector<8x128xf32>
    %78 = arith.addf %74, %77 : vector<8x128xf32>
    %c3_18 = arith.constant 3 : index
    %79 = memref.load %arg2[%c3_18] : memref<6xf32, #tpu.memory_space<smem>>
    %80 = vector.broadcast %79 : f32 to vector<8x128xf32>
    %81 = arith.addf %78, %80 : vector<8x128xf32>
    %cst_19 = arith.constant 0.000000e+00 : f32
    %82 = vector.broadcast %cst_19 : f32 to vector<8x128xf32>
    %83 = arith.maximumf %81, %82 : vector<8x128xf32>
    %c3_20 = arith.constant 3 : index
    %84 = memref.load %arg3[%c3_20] : memref<6xf32, #tpu.memory_space<smem>>
    %85 = vector.broadcast %84 : f32 to vector<8x128xf32>
    %86 = arith.mulf %85, %83 : vector<8x128xf32>
    %87 = arith.addf %67, %86 : vector<8x128xf32>
    %c12 = arith.constant 12 : index
    %88 = memref.load %arg1[%c12] : memref<18xf32, #tpu.memory_space<smem>>
    %89 = vector.broadcast %88 : f32 to vector<8x128xf32>
    %90 = arith.mulf %89, %1 : vector<8x128xf32>
    %c13 = arith.constant 13 : index
    %91 = memref.load %arg1[%c13] : memref<18xf32, #tpu.memory_space<smem>>
    %92 = vector.broadcast %91 : f32 to vector<8x128xf32>
    %93 = arith.mulf %92, %3 : vector<8x128xf32>
    %94 = arith.addf %90, %93 : vector<8x128xf32>
    %c14 = arith.constant 14 : index
    %95 = memref.load %arg1[%c14] : memref<18xf32, #tpu.memory_space<smem>>
    %96 = vector.broadcast %95 : f32 to vector<8x128xf32>
    %97 = arith.mulf %96, %5 : vector<8x128xf32>
    %98 = arith.addf %94, %97 : vector<8x128xf32>
    %c4_21 = arith.constant 4 : index
    %99 = memref.load %arg2[%c4_21] : memref<6xf32, #tpu.memory_space<smem>>
    %100 = vector.broadcast %99 : f32 to vector<8x128xf32>
    %101 = arith.addf %98, %100 : vector<8x128xf32>
    %cst_22 = arith.constant 0.000000e+00 : f32
    %102 = vector.broadcast %cst_22 : f32 to vector<8x128xf32>
    %103 = arith.maximumf %101, %102 : vector<8x128xf32>
    %c4_23 = arith.constant 4 : index
    %104 = memref.load %arg3[%c4_23] : memref<6xf32, #tpu.memory_space<smem>>
    %105 = vector.broadcast %104 : f32 to vector<8x128xf32>
    %106 = arith.mulf %105, %103 : vector<8x128xf32>
    %107 = arith.addf %87, %106 : vector<8x128xf32>
    %c15 = arith.constant 15 : index
    %108 = memref.load %arg1[%c15] : memref<18xf32, #tpu.memory_space<smem>>
    %109 = vector.broadcast %108 : f32 to vector<8x128xf32>
    %110 = arith.mulf %109, %1 : vector<8x128xf32>
    %c16 = arith.constant 16 : index
    %111 = memref.load %arg1[%c16] : memref<18xf32, #tpu.memory_space<smem>>
    %112 = vector.broadcast %111 : f32 to vector<8x128xf32>
    %113 = arith.mulf %112, %3 : vector<8x128xf32>
    %114 = arith.addf %110, %113 : vector<8x128xf32>
    %c17 = arith.constant 17 : index
    %115 = memref.load %arg1[%c17] : memref<18xf32, #tpu.memory_space<smem>>
    %116 = vector.broadcast %115 : f32 to vector<8x128xf32>
    %117 = arith.mulf %116, %5 : vector<8x128xf32>
    %118 = arith.addf %114, %117 : vector<8x128xf32>
    %c5_24 = arith.constant 5 : index
    %119 = memref.load %arg2[%c5_24] : memref<6xf32, #tpu.memory_space<smem>>
    %120 = vector.broadcast %119 : f32 to vector<8x128xf32>
    %121 = arith.addf %118, %120 : vector<8x128xf32>
    %cst_25 = arith.constant 0.000000e+00 : f32
    %122 = vector.broadcast %cst_25 : f32 to vector<8x128xf32>
    %123 = arith.maximumf %121, %122 : vector<8x128xf32>
    %c5_26 = arith.constant 5 : index
    %124 = memref.load %arg3[%c5_26] : memref<6xf32, #tpu.memory_space<smem>>
    %125 = vector.broadcast %124 : f32 to vector<8x128xf32>
    %126 = arith.mulf %125, %123 : vector<8x128xf32>
    %127 = arith.addf %107, %126 : vector<8x128xf32>
    %c0_27 = arith.constant 0 : index
    %c0_28 = arith.constant 0 : index
    %128 = vector.load %arg6[%c0_27, %c0_28] : memref<8x128xf32, #tpu.memory_space<vmem>>, vector<8x128xf32>
    tpu.vector_store %arg6[%c0_27, %c0_28], %127 {strides = array<i32>} : memref<8x128xf32, #tpu.memory_space<vmem>>, vector<8x128xf32>,
    return
  }
  func.func @transform_0(%arg0: i32) -> i32 {
    %c0_i32 = arith.constant 0 : i32
    %c0_i32_0 = arith.constant 0 : i32
    return %c0_i32 : i32
  }
  func.func @transform_1(%arg0: i32) -> i32 {
    %c0_i32 = arith.constant 0 : i32
    %c0_i32_0 = arith.constant 0 : i32
    return %c0_i32 : i32
  }
  func.func @transform_2(%arg0: i32) -> i32 {
    %c0_i32 = arith.constant 0 : i32
    %c0_i32_0 = arith.constant 0 : i32
    return %c0_i32 : i32
  }
  func.func @transform_3(%arg0: i32) -> i32 {
    %c0_i32 = arith.constant 0 : i32
    %c0_i32_0 = arith.constant 0 : i32
    return %c0_i32 : i32
  }
  func.func @transform_4(%arg0: i32) -> (i32, i32, i32) {
    %c0_i32 = arith.constant 0 : i32
    %c0_i32_0 = arith.constant 0 : i32
    %c0_i32_1 = arith.constant 0 : i32
    return %c0_i32, %c0_i32_0, %arg0 : i32, i32, i32
  }
  func.func @transform_5(%arg0: i32) -> (i32, i32) {
    %c0_i32 = arith.constant 0 : i32
    %c0_i32_0 = arith.constant 0 : i32
    return %c0_i32, %arg0 : i32, i32
  }
}

</mosaic_0001>

<bundles_post_ra>
// kernel: tpu_custom_call.1
= control target key start
LH: loop header
LB: loop body
LE: loop exit
PB: predicated region body
PF: predicated region fallthrough
CT: control target
= control target key end

     0   :  { %11 = vsyncpa [#allocation6], 0  ;;  %s502_s0 = inlined_call_operand.vmem [shape: f32[18], index: 0, kind: input, shape index: {}]   ;;  %s503_s1 = inlined_call_operand.vmem [shape: f32[6], index: 1, kind: input, shape index: {}]   ;;  %s504_s2 = inlined_call_operand.vmem [shape: f32[6], index: 2, kind: input, shape index: {}]   ;;  %s505_s3 = inlined_call_operand.<no memory space> [shape: f32[1], index: 3, kind: input, shape index: {}]   ;;  %s506_s4 = inlined_call_operand.hbm [shape: f32[3,8,128], index: 4, kind: input, shape index: {}]   ;;  %s507_s5 = inlined_call_operand.hbm [shape: f32[8,128], index: 5, kind: output, shape index: {}]  }
   0x1   :  { %12 = vsyncpa [#allocation8], 0 }
   0x2   :  { %13 = vsyncpa [#allocation4], 0  ;;  %s31_s20 = sshll.u32 %s503_s1, 4  ;;  %s32_s20 = int_to_ptr.vmem [resolvable:$true] %s31_s20 }
   0x3   :  { %14 = vsyncpa [#allocation5], 0  ;;  %s21_s23 = sshll.u32 %s502_s0, 4  ;;  %s245_s24 = scalar_lea.vmem %s32_s20, 16  ;;  %s22_s23 = int_to_ptr.vmem [resolvable:$true] %s21_s23 }
   0x4   :  { %p246_p0 = scmp.ne.s32.totalorder %s32_s20, %s245_s24  ;;  %p250_p1 = scmp.lt.s32.totalorder %s32_s20, %s32_s20 }
   0x5   :  { %p251_p2 = scmp.lt.s32.totalorder %s245_s24, %s245_s24 }
   0x7   :  { %p252_p3 = por %p251_p2, %p250_p1 }
   0x9   :  { %p253_p4 = pnand %p252_p3, %p246_p0 }
   0xb   :  { %256 = shalt.err (!%p253_p4)
}
   0xc   :  { %s333_s25 = smov [#allocation7]   ;;  %s257_s26 = scalar_lea.vmem %s22_s23, 16 }
   0xd   :  { %34 = dma.vmem_to_smem %s32_s20, 16, %s333_s25, [#allocation8]  }
   0xe   :  { %p258_p5 = scmp.ne.s32.totalorder %s22_s23, %s257_s26  ;;  %p262_p6 = scmp.lt.s32.totalorder %s22_s23, %s22_s23 }
   0xf   :  { %p263_p7 = scmp.lt.s32.totalorder %s257_s26, %s257_s26 }
  0x11   :  { %p264_p8 = por %p263_p7, %p262_p6 }
  0x13   :  { %p265_p9 = pnand %p264_p8, %p258_p5 }
  0x15   :  { %268 = shalt.err (!%p265_p9)
}
  0x16   :  { %s334_s1 = smov [#allocation3]   ;;  %s41_s28 = sshll.u32 %s504_s2, 4  ;;  %s42_s28 = int_to_ptr.vmem [resolvable:$true] %s41_s28 }
  0x17   :  { %24 = dma.vmem_to_smem %s22_s23, 16, %s334_s1, [#allocation6]  }
  0x18   :  { %s269_s29 = scalar_lea.vmem %s42_s28, 16  ;;  %p274_p11 = scmp.lt.s32.totalorder %s42_s28, %s42_s28 }
  0x19   :  { %p270_p10 = scmp.ne.s32.totalorder %s42_s28, %s269_s29  ;;  %p275_p12 = scmp.lt.s32.totalorder %s269_s29, %s269_s29 }
  0x1b   :  { %p276_p13 = por %p275_p12, %p274_p11 }
  0x1d   :  { %p277_p0 = pnand %p276_p13, %p270_p10 }
  0x1f   :  { %280 = shalt.err (!%p277_p0)
}
  0x20   :  { %s335_s30 = smov [#allocation9]   ;;  %s336_s6 = smov [#allocation10]  }
  0x21   :  { %44 = dma.vmem_to_smem %s42_s28, 16, %s335_s30, [#allocation8]  }
  0x22   :  { %s52_s7 = sshll.u32 %s336_s6, 4  ;;  %s281_s10 = scalar_lea.hbm %s506_s4, 384  ;;  %s53_s7 = int_to_ptr.vmem [resolvable:$true] %s52_s7 }
  0x23   :  { %p282_p1 = scmp.ne.s32.totalorder %s506_s4, %s281_s10  ;;  %p285_p2 = scmp.lt.u32.totalorder %s281_s10, %s506_s4 }
  0x25   :  { %p287_p3 = pnand %p285_p2, %p282_p1 }
  0x27   :  { %290 = shalt.err (!%p287_p3)
}
  0x28   :  { %s291_s14 = scalar_lea.vmem %s53_s7, 384  ;;  %p296_p5 = scmp.lt.s32.totalorder %s53_s7, %s53_s7 }
  0x29   :  { %p292_p4 = scmp.ne.s32.totalorder %s53_s7, %s291_s14  ;;  %p297_p6 = scmp.lt.s32.totalorder %s291_s14, %s291_s14 }
  0x2b   :  { %p298_p7 = por %p297_p6, %p296_p5 }
  0x2d   :  { %p299_p8 = pnand %p298_p7, %p292_p4 }
  0x2f   :  { %302 = shalt.err (!%p299_p8)
}
  0x30   :  { %s337_s15 = smov 128   ;;  %s338_s16 = smov 8  }
  0x31   :  { %58 = dma.hbm_to_vmem [thread:$0]  %s506_s4, 384, %s53_s7, [#allocation4], %s337_s15, %s337_s15, %s338_s16  }
  0x32   :  { %325 = dma.done.wait [#allocation6], 16  }
  0x33   :  { %326 = vsyncadd [#allocation6], 4294967280 }
  0x34   :  { %327 = dma.done.wait [#allocation8], 32  }
  0x35   :  { %328 = vsyncadd [#allocation8], 4294967264 }
  0x36   :  { %329 = dma.done.wait [#allocation4], 384  }
  0x37   :  { %330 = vsyncadd [#allocation4], 4294966912 }
  0x38   :  { %71 = sfence }
  0x39   :  { %s79_s19 = sld [smem:[#allocation3]]  ;;  %s211_s20 = sld [smem:[#allocation3 + $0x1]]  ;;  %v395_v0 = vld [vmem:[#allocation10] sm:$0xff]  ;;  %v399_v1 = vld [vmem:[#allocation10 + $0x8] sm:$0xff]  ;;  %v401_v2 = vld [vmem:[#allocation10 + $0x10] sm:$0xff]  ;;  %v78_v9 = vstv %s505_s3 }
  0x3a   :  { %s212_s21 = sld [smem:[#allocation3 + $0x2]]  ;;  %s391_s22 = sld [smem:[#allocation7]] }
  0x3b   :  { %s393_s23 = sld [smem:[#allocation9]]  ;;  %s213_s24 = sld [smem:[#allocation3 + $0x3]] }
  0x3c   :  { %s214_s25 = sld [smem:[#allocation3 + $0x4]]  ;;  %s397_s26 = sld [smem:[#allocation3 + $0x5]] }
  0x3d   :  { %s403_s4 = sld [smem:[#allocation7 + $0x1]]  ;;  %s405_s1 = sld [smem:[#allocation3 + $0x6]] }
  0x3e   :  { %s407_s0 = sld [smem:[#allocation3 + $0x7]]  ;;  %s409_s27 = sld [smem:[#allocation3 + $0x8]] }
  0x3f   :  { %v80_v3 = vstv %s79_s19  ;;  %v83_v5 = vstv %s211_s20  ;;  %s412_s28 = sld [smem:[#allocation9 + $0x1]]  ;;  %s414_s29 = sld [smem:[#allocation7 + $0x2]] }
  0x40   :  { %v81_v4 = vmul.f32 %v80_v3, %v395_v0  ;;  %v87_v6 = vstv %s212_s21  ;;  %v84_v7 = vmul.f32 %v83_v5, %v399_v1  ;;  %s418_s30 = sld [smem:[#allocation3 + $0x9]]  ;;  %s420_s6 = sld [smem:[#allocation3 + $0xa]]  ;;  %v91_v16 = vstv %s391_s22 }
  0x41   :  { %v88_v8 = vmul.f32 %v87_v6, %v401_v2  ;;  %v99_v10 = vstv %s213_s24  ;;  %s425_s9 = sld [smem:[#allocation9 + $0x2]]  ;;  %s427_s10 = sld [smem:[#allocation3 + $0xb]]  ;;  %v95_v17 = vstv %s393_s23 }
  0x42   :  { %v102_v11 = vstv %s214_s25  ;;  %v85_v12 = vadd.f32 %v84_v7, %v81_v4  ;;  %v100_v13 = vmul.f32 %v99_v10, %v395_v0  ;;  %v106_v15 = vstv %s397_s26  ;;  %s432_s11 = sld [smem:[#allocation7 + $0x3]]  ;;  %s434_s12 = sld [smem:[#allocation3 + $0xc]] }
  0x43   :  { %v103_v14 = vmul.f32 %v102_v11, %v399_v1  ;;  %v107_v18 = vmul.f32 %v106_v15, %v401_v2  ;;  %v118_v19 = vstv %s405_s1  ;;  %s440_s3 = sld [smem:[#allocation3 + $0xd]]  ;;  %s442_s2 = sld [smem:[#allocation3 + $0xe]]  ;;  %v110_v24 = vstv %s403_s4 }
  0x44   :  { %v89_v20 = vadd.f32 %v88_v8, %v85_v12  ;;  %v119_v22 = vmul.f32 %v118_v19, %v395_v0  ;;  %v121_v23 = vstv %s407_s0  ;;  %v125_v26 = vstv %s409_s27  ;;  %s450_s13 = sld [smem:[#allocation9 + $0x3]]  ;;  %s452_s14 = sld [smem:[#allocation3 + $0xf]] }
  0x45   :  { %v104_v21 = vadd.f32 %v103_v14, %v100_v13  ;;  %v122_v25 = vmul.f32 %v121_v23, %v399_v1  ;;  %v129_v27 = vstv %s414_s29  ;;  %v126_v30 = vmul.f32 %v125_v26, %v401_v2  ;;  %s456_s15 = sld [smem:[#allocation7 + $0x4]]  ;;  %s461_s16 = sld [smem:[#allocation3 + $0x10]] }
  0x46   :  { %v92_v28 = vadd.f32 %v91_v16, %v89_v20  ;;  %v137_v31 = vstv %s418_s30  ;;  %v140_v34 = vstv %s420_s6  ;;  %s463_s17 = sld [smem:[#allocation3 + $0x11]]  ;;  %v114_v40 = vstv %s412_s28  ;;  %s474_s18 = sld [smem:[#allocation9 + $0x4]] }
  0x47   :  { %v108_v29 = vadd.f32 %v107_v18, %v104_v21  ;;  %v123_v32 = vadd.f32 %v122_v25, %v119_v22  ;;  %v138_v33 = vmul.f32 %v137_v31, %v395_v0  ;;  %v144_v35 = vstv %s427_s10  ;;  %s476_s19 = sld [smem:[#allocation7 + $0x5]]  ;;  %s339_s21 = smov [#allocation11]  }
  0x48   :  { %v93_v36 = vmax.f32 %v92_v28, 0.0  ;;  %v141_v38 = vmul.f32 %v140_v34, %v399_v1  ;;  %v145_v39 = vmul.f32 %v144_v35, %v401_v2  ;;  %v133_v42 = vstv %s425_s9  ;;  %s237_s20 = sld [smem:[#allocation9 + $0x5]]  ;;  %s200_s22 = sshll.u32 %s339_s21, 4  ;;  %s201_s22 = int_to_ptr.vmem [resolvable:$true] %s200_s22 }
  0x49   :  { %v111_v37 = vadd.f32 %v110_v24, %v108_v29  ;;  %v127_v41 = vadd.f32 %v126_v30, %v123_v32  ;;  %v156_v43 = vstv %s434_s12  ;;  %v148_v49 = vstv %s432_s11  ;;  %s303_s23 = scalar_lea.vmem %s201_s22, 128  ;;  %p308_p10 = scmp.lt.s32.totalorder %s201_s22, %s201_s22 }
  0x4a   :  { %v96_v44 = vmul.f32 %v95_v17, %v93_v36  ;;  %v142_v46 = vadd.f32 %v141_v38, %v138_v33  ;;  %v157_v47 = vmul.f32 %v156_v43, %v395_v0  ;;  %v159_v50 = vstv %s440_s3  ;;  %p304_p9 = scmp.ne.s32.totalorder %s201_s22, %s303_s23  ;;  %p309_p11 = scmp.lt.s32.totalorder %s303_s23, %s303_s23 }
  0x4b   :  { %v112_v45 = vmax.f32 %v111_v37, 0.0  ;;  %v130_v48 = vadd.f32 %v129_v27, %v127_v41  ;;  %v163_v51 = vstv %s442_s2  ;;  %v160_v55 = vmul.f32 %v159_v50, %v399_v1 }
  0x4c   :  { %v97_v52 = vadd.f32 %v96_v44, %v78_v9  ;;  %v146_v54 = vadd.f32 %v145_v39, %v142_v46  ;;  %v152_v57 = vstv %s450_s13  ;;  %v164_v58 = vmul.f32 %v163_v51, %v401_v2  ;;  %p310_p12 = por %p309_p11, %p308_p10 }
  0x4d   :  { %v115_v53 = vmul.f32 %v114_v40, %v112_v45  ;;  %v131_v56 = vmax.f32 %v130_v48, 0.0  ;;  %v175_v59 = vstv %s452_s14  ;;  %v161_v62 = vadd.f32 %v160_v55, %v157_v47 }
  0x4e   :  { %v149_v61 = vadd.f32 %v148_v49, %v146_v54  ;;  %v176_v63 = vmul.f32 %v175_v59, %v395_v0  ;;  %v167_v4 = vstv %s456_s15  ;;  %v178_v5 = vstv %s461_s16  ;;  %p311_p13 = pnand %p310_p12, %p304_p9 }
  0x4f   :  { %v116_v60 = vadd.f32 %v115_v53, %v97_v52  ;;  %v134_v3 = vmul.f32 %v133_v42, %v131_v56  ;;  %v182_v6 = vstv %s463_s17  ;;  %v165_v8 = vadd.f32 %v164_v58, %v161_v62 }
  0x50   :  { %v150_v7 = vmax.f32 %v149_v61, 0.0  ;;  %v179_v9 = vmul.f32 %v178_v5, %v399_v1  ;;  %v183_v10 = vmul.f32 %v182_v6, %v401_v2  ;;  %v171_v15 = vstv %s474_s18 }
  0x51   :  { %v135_v11 = vadd.f32 %v134_v3, %v116_v60  ;;  %v168_v13 = vadd.f32 %v167_v4, %v165_v8  ;;  %v186_v16 = vstv %s476_s19  ;;  %v190_v21 = vstv %s237_s20 }
  0x52   :  { %v153_v12 = vmul.f32 %v152_v57, %v150_v7  ;;  %v180_v14 = vadd.f32 %v179_v9, %v176_v63 }
  0x53   :  { %v169_v18 = vmax.f32 %v168_v13, 0.0 }
  0x54   :  { %v154_v17 = vadd.f32 %v153_v12, %v135_v11  ;;  %v184_v0 = vadd.f32 %v183_v10, %v180_v14 }
  0x55   :  { %v172_v19 = vmul.f32 %v171_v15, %v169_v18 }
  0x56   :  { %v187_v20 = vadd.f32 %v186_v16, %v184_v0 }
  0x57   :  { %v173_v22 = vadd.f32 %v172_v19, %v154_v17 }
  0x58   :  { %v188_v23 = vmax.f32 %v187_v20, 0.0 }
  0x5a   :  { %v191_v24 = vmul.f32 %v190_v21, %v188_v23 }
  0x5c   :  { %v192_v1 = vadd.f32 %v191_v24, %v173_v22 }
  0x5e   :  { %193 = vst [vmem:[#allocation11] sm:$0xff] %v192_v1 }
  0x5f   :  { %314 = shalt.err (!%p311_p13)
}
  0x60   :  { %s315_s26 = scalar_lea.hbm %s507_s5, 128 }
  0x61   :  { %p316_p0 = scmp.ne.s32.totalorder %s507_s5, %s315_s26  ;;  %p319_p1 = scmp.lt.u32.totalorder %s315_s26, %s507_s5 }
  0x63   :  { %p321_p2 = pnand %p319_p1, %p316_p0 }
  0x65   :  { %324 = shalt.err (!%p321_p2)
}
  0x66   :  { %203 = dma.vmem_to_hbm [thread:$0]  %s201_s22, 128, %s507_s5, [#allocation5]  }
  0x67   :  { %331 = dma.done.wait [#allocation5], 128  }
  0x68   :  { %332 = vsyncadd [#allocation5], 4294967168 }
  0x69   :  { %207 = vsyncpa [#allocation4], 1 }
  0x6a   :  { %208 = vsyncpa [#allocation5], 1 }
  0x6b   :  { %209 = vsyncpa [#allocation6], 1 }
  0x6c   :  { %210 = vsyncpa [#allocation8], 1 }

</bundles_post_ra>
